<compile_context>
chip_gen: v6e
topology: v6e:2x2x1
jax: 0.10.0
libtpu: 0.0.40
codegen_flags: <defaults>
</compile_context>

<pallas_src>
import functools

import jax
import jax.numpy as jnp
from jax.experimental import pallas as pl
from jax.experimental.pallas import tpu as pltpu


# ----------------------------------------------------------------------------
# Fused kernel: one (batch b, layer l) grid step of the whole GAU stack
# ----------------------------------------------------------------------------
def gau_stack_kernel(x_ref, mask_ref, rope_ref,
                     wu_ref, wv_ref, wb_ref, wo_ref,
                     vecs_ref, bias_ref, o_ref, *, eps):
    l = pl.program_id(1)
    H = x_ref.shape[-1]
    e = wu_ref.shape[-1]
    s = wb_ref.shape[-1]
    half = s // 2

    # Layer 0: copy the encoder input into the resident output block.  For l > 0 the output
    # block (indexed on b only, l marked "arbitrary") still holds layer l-1's activations.
    @pl.when(l == 0)
    def _():
        o_ref[0] = x_ref[0]

    x = o_ref[0]                                   # (N, H) f32: layer input / residual

    # Packed per-layer small vectors (single lane-dense operand, sliced statically).
    vecs = vecs_ref[0]                             # (10, Dmax) f32
    ln_g = vecs[0:1, :H]
    ln_b = vecs[1:2, :H]
    b_o = vecs[2:3, :H]
    b_u = vecs[3:4, :e]
    b_v = vecs[4:5, :e]
    b_b = vecs[5:6, :s]
    gam_q = vecs[6:7, :s]                          # already scaled by 1/max_pos
    gam_k = vecs[7:8, :s]
    bet_q = vecs[8:9, :s]                          # already scaled by 1/max_pos
    bet_k = vecs[9:10, :s]

    # --- LayerNorm (f32, VPU) ---
    mu = jnp.mean(x, axis=-1, keepdims=True)
    xc = x - mu
    var = jnp.mean(xc * xc, axis=-1, keepdims=True)
    xn = xc * jax.lax.rsqrt(var + eps) * ln_g + ln_b
    xn_b = xn.astype(jnp.bfloat16)                 # bf16 operand for the MXU

    # --- u / v / base projections (lane-dense heads) + SiLU ---
    u = jnp.dot(xn_b, wu_ref[0], preferred_element_type=jnp.float32) + b_u
    v = jnp.dot(xn_b, wv_ref[0], preferred_element_type=jnp.float32) + b_v
    base = jnp.dot(xn_b, wb_ref[0], preferred_element_type=jnp.float32) + b_b
    u = u * jax.nn.sigmoid(u)                      # SiLU in f32 (EUP sigmoid)
    v = v * jax.nn.sigmoid(v)
    base = base * jax.nn.sigmoid(base)

    # --- per-head affine (1/max_pos pre-folded into the q affine in the wrapper) ---
    q = base * gam_q + bet_q                       # (N, s)
    k = base * gam_k + bet_k                       # (N, s)

    # --- RoPE in split-halves form: no swap matrix / concatenate / roll needed ---
    cos_h = rope_ref[0]                            # (N, s/2)
    sin_h = rope_ref[1]                            # (N, s/2)

    def rope_halves(t):
        t1 = t[:, :half]
        t2 = t[:, half:]
        return t1 * cos_h - t2 * sin_h, t2 * cos_h + t1 * sin_h

    q1, q2 = rope_halves(q)
    k1, k2 = rope_halves(k)

    # --- quadratic kernel: relu(q k^T / max_pos + bias)^2 as two half-contractions ---
    dn = (((1,), (1,)), ((), ()))
    qk = jax.lax.dot_general(q1.astype(jnp.bfloat16), k1.astype(jnp.bfloat16),
                             dimension_numbers=dn, preferred_element_type=jnp.float32)
    qk = qk + jax.lax.dot_general(q2.astype(jnp.bfloat16), k2.astype(jnp.bfloat16),
                                  dimension_numbers=dn, preferred_element_type=jnp.float32)
    kern = jnp.maximum(qk + bias_ref[0], 0.0)
    kern = kern * kern                             # (N, N) f32

    # --- attention mask: column mask folded into v, row mask into av (no NxN mask) ---
    m_row = jnp.transpose(mask_ref[0])             # (1, N) lane-dense -> (N, 1)
    vm = (v * m_row).astype(jnp.bfloat16)
    av = jnp.dot(kern.astype(jnp.bfloat16), vm, preferred_element_type=jnp.float32)
    av = av * m_row

    # --- gate with u, output projection, residual; stays resident for layer l+1 ---
    gated = (u * av).astype(jnp.bfloat16)
    out = jnp.dot(gated, wo_ref[0], preferred_element_type=jnp.float32) + b_o
    o_ref[0] = out + x


# ----------------------------------------------------------------------------
# Wrapper: whole encoder in one pallas_call
# ----------------------------------------------------------------------------
def flash_quad_encoder_pallas(hidden_states, attention_mask, layer_params,
                              *, s, max_pos, eps):
    B, N, H = hidden_states.shape
    L = len(layer_params)
    D = layer_params[0]["w_uv"].shape[1]
    e = (D - s) // 2
    half = s // 2
    assert N <= max_pos, "only the <=512 relative-position path is implemented"

    x = hidden_states.astype(jnp.float32)

    # Shared RoPE tables, built once for all layers / batches.
    pos = jnp.arange(N, dtype=jnp.float32)
    inv_freq = 10000.0 ** (-jnp.arange(half, dtype=jnp.float32) / float(half))
    sinu = pos[:, None] * inv_freq[None, :]
    rope = jnp.stack([jnp.cos(sinu), jnp.sin(sinu)])             # (2, N, s/2) f32

    # Per-layer parameters stacked along a leading L axis; weights to bf16 for the MXU.
    w_uv = jnp.stack([p["w_uv"] for p in layer_params])          # (L, H, 2e+s)
    wu_all = w_uv[:, :, :e].astype(jnp.bfloat16)
    wv_all = w_uv[:, :, e:2 * e].astype(jnp.bfloat16)
    wb_all = w_uv[:, :, 2 * e:].astype(jnp.bfloat16)
    wo_all = jnp.stack([p["w_o"] for p in layer_params]).astype(jnp.bfloat16)   # (L, e, H)

    # Pack the tiny per-layer vectors into one lane-dense operand (1/max_pos folded into q).
    DMAX = max(H, e, s)
    NV = 10
    inv_p = 1.0 / float(max_pos)

    def pad_row(vec):
        return jnp.pad(vec.astype(jnp.float32), (0, DMAX - vec.shape[0]))

    def pack(p):
        b_uv = p["b_uv"][0]
        return jnp.stack([
            pad_row(p["ln_g"][0]), pad_row(p["ln_b"][0]), pad_row(p["b_o"][0]),
            pad_row(b_uv[:e]), pad_row(b_uv[e:2 * e]), pad_row(b_uv[2 * e:]),
            pad_row(p["gamma"][0] * inv_p), pad_row(p["gamma"][1]),
            pad_row(p["beta"][0] * inv_p), pad_row(p["beta"][1]),
        ])

    vecs_all = jnp.stack([pack(p) for p in layer_params])        # (L, 10, DMAX)

    # Toeplitz relative-position bias, stacked (L, N, N) (see TODO at top of file).
    idx = jnp.arange(N)[None, :] - jnp.arange(N)[:, None] + (max_pos - 1)
    w_stack = jnp.stack([p["w"] for p in layer_params])          # (L, 2*max_pos-1)
    bias_all = w_stack[:, idx].astype(jnp.float32)               # (L, N, N)

    mask2 = attention_mask.astype(jnp.float32).reshape(B, 1, N)  # lane-dense mask

    block_shapes = [
        (1, N, H),        # x (encoder input; DMA'd once per batch element)
        (1, 1, N),        # mask, lane-dense
        (2, N, half),     # RoPE cos/sin (shared constant; fetched once per core)
        (1, H, e),        # W_u
        (1, H, e),        # W_v
        (1, H, s),        # W_base
        (1, e, H),        # W_o
        (1, NV, DMAX),    # packed small vectors
        (1, N, N),        # Toeplitz bias
    ]
    index_maps = [
        lambda b, l: (b, 0, 0),
        lambda b, l: (b, 0, 0),
        lambda b, l: (0, 0, 0),
        lambda b, l: (l, 0, 0),
        lambda b, l: (l, 0, 0),
        lambda b, l: (l, 0, 0),
        lambda b, l: (l, 0, 0),
        lambda b, l: (l, 0, 0),
        lambda b, l: (l, 0, 0),
    ]
    in_specs = [pl.BlockSpec(bs, im) for bs, im in zip(block_shapes, index_maps)]
    out_spec = pl.BlockSpec((1, N, H), lambda b, l: (b, 0, 0))

    operands = (x, mask2, rope, wu_all, wv_all, wb_all, wo_all, vecs_all, bias_all)

    # Device-aware VMEM budget: ~80% of capacity (~51 MiB on v7x, 100 MiB cap on v5e/v6e);
    # requested footprint uses per-BLOCK shapes x 2 pipeline buffers, not whole-array sizes.
    try:
        cap = int(pltpu.get_tpu_info().vmem_capacity_bytes)
    except Exception:
        cap = 64 << 20                      # conservative default (v7x per-core VMEM)
    budget = min(int(cap * 0.8), 100 << 20)

    def blk_bytes(shape, dtype):
        n = 1
        for d in shape:
            n *= int(d)
        return n * jnp.dtype(dtype).itemsize

    per_step = sum(2 * blk_bytes(bs, op.dtype) for bs, op in zip(block_shapes, operands))
    per_step += 2 * blk_bytes((1, N, H), jnp.float32)            # output block
    inter = (2 * N * H + 5 * N * e + 10 * N * s + 3 * N * N) * 4  # rough f32 intermediates
    vmem_limit = int(min(budget, max(32 << 20, per_step + inter + (4 << 20))))

    kernel = functools.partial(gau_stack_kernel, eps=eps)
    return pl.pallas_call(
        kernel,
        out_shape=jax.ShapeDtypeStruct((B, N, H), jnp.float32),
        grid=(B, L),
        in_specs=in_specs,
        out_specs=out_spec,
        compiler_params=pltpu.CompilerParams(
            dimension_semantics=("parallel", "arbitrary"),
            vmem_limit_bytes=vmem_limit),
    )(*operands)


# ----------------------------------------------------------------------------
# Pure-JAX reference (mirrors the PyTorch GAU forward) for validation
# ----------------------------------------------------------------------------
def gau_layer_ref(x, mask, p, *, s, e, max_pos, eps):
    B, N, H = x.shape
    shortcut = x
    mu = jnp.mean(x, axis=-1, keepdims=True)
    var = jnp.mean((x - mu) ** 2, axis=-1, keepdims=True)
    xn = (x - mu) * jax.lax.rsqrt(var + eps) * p["ln_g"][0] + p["ln_b"][0]
    uv = jnp.einsum("bnh,hd->bnd", xn, p["w_uv"],
                    preferred_element_type=jnp.float32) + p["b_uv"][0]
    uv = jax.nn.silu(uv)
    u, v, base = uv[..., :e], uv[..., e:2 * e], uv[..., 2 * e:]

    q = base * p["gamma"][0] + p["beta"][0]
    k = base * p["gamma"][1] + p["beta"][1]

    half = s // 2
    pos = jnp.arange(N, dtype=jnp.float32)
    inv_freq = 10000.0 ** (-jnp.arange(half, dtype=jnp.float32) / float(half))
    sinu = pos[:, None] * inv_freq[None, :]
    sin_t, cos_t = jnp.sin(sinu), jnp.cos(sinu)

    def rope(t):
        t1, t2 = t[..., :half], t[..., half:]
        return jnp.concatenate([t1 * cos_t - t2 * sin_t, t2 * cos_t + t1 * sin_t], axis=-1)

    q, k = rope(q), rope(k)
    qk = jnp.einsum("bnd,bmd->bnm", q, k, preferred_element_type=jnp.float32)

    idx = jnp.arange(max_pos)[None, :] - jnp.arange(max_pos)[:, None] + (max_pos - 1)
    bias = p["w"][idx][:N, :N]

    kern = jnp.square(jnp.maximum(qk / max_pos + bias[None], 0.0))
    attn_mask = mask[:, None, :] * mask[:, :, None]
    kern = kern * attn_mask
    out = u * jnp.einsum("bnm,bme->bne", kern, v, preferred_element_type=jnp.float32)
    out = jnp.einsum("bne,eh->bnh", out, p["w_o"],
                     preferred_element_type=jnp.float32) + p["b_o"][0]
    return out + shortcut


def encoder_ref(x, mask, layer_params, *, s, e, max_pos, eps):
    for p in layer_params:
        x = gau_layer_ref(x, mask, p, s=s, e=e, max_pos=max_pos, eps=eps)
    return x


# ----------------------------------------------------------------------------
# Deterministic parameter construction (synthetic; mirrors GAU.__init__ shapes)
# ----------------------------------------------------------------------------
def make_layer_params(key, H, e, s, max_pos):
    D = 2 * e + s
    ks = jax.random.split(key, 8)
    std = 0.02
    return {
        "ln_g": jnp.ones((1, H), jnp.float32),
        "ln_b": jnp.zeros((1, H), jnp.float32),
        "w_uv": jax.random.normal(ks[0], (H, D), jnp.float32) * std,
        "b_uv": jnp.zeros((1, D), jnp.float32),
        "gamma": jax.random.normal(ks[1], (2, s), jnp.float32) * std,
        "beta": jax.random.normal(ks[2], (2, s), jnp.float32) * std,
        "w": jax.random.normal(ks[3], (2 * max_pos - 1,), jnp.float32) * std,
        # a, b exist in the module but are only used for seq_len > 512 (RoPE-Toeplitz path).
        "a": jax.random.normal(ks[4], (1, s), jnp.float32) * std,
        "b": jax.random.normal(ks[5], (1, s), jnp.float32) * std,
        "w_o": jax.random.normal(ks[6], (e, H), jnp.float32) * std,
        "b_o": jnp.zeros((1, H), jnp.float32),
    }


if __name__ == "__main__":
    # config: hidden_size=32, expansion_factor=2 (e=64), s=16, num_hidden_layers=2,
    # max_position_embeddings=16, layer_norm_eps=1e-5, hidden_act="silu"
    B, N, H = 2, 8, 32
    E_FACTOR, S, MAX_POS, N_LAYERS, EPS = 2, 16, 16, 2, 1e-5
    E = H * E_FACTOR

    root = jax.random.PRNGKey(0)
    k_x, k_p = jax.random.split(root)
    hidden_states = jax.random.normal(k_x, (B, N, H), jnp.float32)
    attention_mask = jnp.ones((B, N), jnp.float32)

    layer_keys = jax.random.split(k_p, N_LAYERS)
    layer_params = [make_layer_params(k, H, E, S, MAX_POS) for k in layer_keys]

    encoder = jax.jit(functools.partial(flash_quad_encoder_pallas,
                                        s=S, max_pos=MAX_POS, eps=EPS))
    out = encoder(hidden_states, attention_mask, layer_params)
    out = jax.block_until_ready(out)

    ref = encoder_ref(hidden_states, attention_mask, layer_params,
                      s=S, e=E, max_pos=MAX_POS, eps=EPS)
    ref = jax.block_until_ready(ref)

    assert out.shape == (B, N, H)
    assert jnp.allclose(out, ref, atol=1e-2, rtol=1e-2), (
        f"max abs diff {float(jnp.max(jnp.abs(out - ref)))}")

    print("KERNEL_OK")
</pallas_src>

<mosaic_0001>
module attributes {stable_mosaic.version = 11 : i64} {
  func.func @gau_stack_kernel(%arg0: i32, %arg1: i32, %arg2: memref<1x8x32xf32, #tpu.memory_space<vmem>>, %arg3: memref<1x1x8xf32, #tpu.memory_space<vmem>>, %arg4: memref<2x8x8xf32, #tpu.memory_space<vmem>>, %arg5: memref<1x32x64xbf16, #tpu.memory_space<vmem>>, %arg6: memref<1x32x64xbf16, #tpu.memory_space<vmem>>, %arg7: memref<1x32x16xbf16, #tpu.memory_space<vmem>>, %arg8: memref<1x64x32xbf16, #tpu.memory_space<vmem>>, %arg9: memref<1x10x64xf32, #tpu.memory_space<vmem>>, %arg10: memref<1x8x8xf32, #tpu.memory_space<vmem>>, %arg11: memref<1x8x32xf32, #tpu.memory_space<vmem>>) attributes {dimension_semantics = [#tpu.dimension_semantics<parallel>, #tpu.dimension_semantics<arbitrary>], iteration_bounds = array<i64: 2, 2>, scalar_prefetch = 0 : i64, scratch_operands = 0 : i64, tpu.core_type = #tpu.core_type<tc>, window_params = [{transform_indices = @transform_0, window_bounds = array<i64: 1, 8, 32>}, {transform_indices = @transform_1, window_bounds = array<i64: 1, 1, 8>}, {pipeline_mode = #tpu.pipeline_mode<synchronous>, transform_indices = @transform_2, window_bounds = array<i64: 2, 8, 8>}, {transform_indices = @transform_3, window_bounds = array<i64: 1, 32, 64>}, {transform_indices = @transform_4, window_bounds = array<i64: 1, 32, 64>}, {transform_indices = @transform_5, window_bounds = array<i64: 1, 32, 16>}, {transform_indices = @transform_6, window_bounds = array<i64: 1, 64, 32>}, {transform_indices = @transform_7, window_bounds = array<i64: 1, 10, 64>}, {transform_indices = @transform_8, window_bounds = array<i64: 1, 8, 8>}, {transform_indices = @transform_9, window_bounds = array<i64: 1, 8, 32>}]} {
    %c0_i32 = arith.constant 0 : i32
    %0 = arith.cmpi eq, %arg1, %c0_i32 : i32
    %1 = arith.extui %0 : i1 to i32
    %c0_i32_0 = arith.constant 0 : i32
    %2 = arith.cmpi ne, %1, %c0_i32_0 : i32
    scf.if %2 {
      %c0_47 = arith.constant 0 : index
      %c0_48 = arith.constant 0 : index
      %c0_49 = arith.constant 0 : index
      %133 = vector.load %arg2[%c0_47, %c0_48, %c0_49] : memref<1x8x32xf32, #tpu.memory_space<vmem>>, vector<1x8x32xf32>
      %134 = vector.shape_cast %133 : vector<1x8x32xf32> to vector<8x32xf32>
      %c0_50 = arith.constant 0 : index
      %c0_51 = arith.constant 0 : index
      %c0_52 = arith.constant 0 : index
      %135 = vector.load %arg11[%c0_50, %c0_51, %c0_52] : memref<1x8x32xf32, #tpu.memory_space<vmem>>, vector<1x8x32xf32>
      %136 = vector.shape_cast %135 : vector<1x8x32xf32> to vector<8x32xf32>
      %137 = vector.shape_cast %134 : vector<8x32xf32> to vector<1x8x32xf32>
      tpu.vector_store %arg11[%c0_50, %c0_51, %c0_52], %137 {strides = array<i32>} : memref<1x8x32xf32, #tpu.memory_space<vmem>>, vector<1x8x32xf32>,
    } else {
    }
    %c0 = arith.constant 0 : index
    %c0_1 = arith.constant 0 : index
    %c0_2 = arith.constant 0 : index
    %3 = vector.load %arg11[%c0, %c0_1, %c0_2] : memref<1x8x32xf32, #tpu.memory_space<vmem>>, vector<1x8x32xf32>
    %4 = vector.shape_cast %3 : vector<1x8x32xf32> to vector<8x32xf32>
    %c0_3 = arith.constant 0 : index
    %c0_4 = arith.constant 0 : index
    %c0_5 = arith.constant 0 : index
    %5 = vector.load %arg9[%c0_3, %c0_4, %c0_5] : memref<1x10x64xf32, #tpu.memory_space<vmem>>, vector<1x10x64xf32>
    %6 = vector.shape_cast %5 : vector<1x10x64xf32> to vector<10x64xf32>
    %7 = vector.extract_strided_slice %6 {offsets = [0, 0], sizes = [1, 32], strides = [1, 1]} : vector<10x64xf32> to vector<1x32xf32>
    %8 = vector.extract_strided_slice %6 {offsets = [1, 0], sizes = [1, 32], strides = [1, 1]} : vector<10x64xf32> to vector<1x32xf32>
    %9 = vector.extract_strided_slice %6 {offsets = [2, 0], sizes = [1, 32], strides = [1, 1]} : vector<10x64xf32> to vector<1x32xf32>
    %10 = vector.extract_strided_slice %6 {offsets = [3, 0], sizes = [1, 64], strides = [1, 1]} : vector<10x64xf32> to vector<1x64xf32>
    %11 = vector.extract_strided_slice %6 {offsets = [4, 0], sizes = [1, 64], strides = [1, 1]} : vector<10x64xf32> to vector<1x64xf32>
    %12 = vector.extract_strided_slice %6 {offsets = [5, 0], sizes = [1, 16], strides = [1, 1]} : vector<10x64xf32> to vector<1x16xf32>
    %13 = vector.extract_strided_slice %6 {offsets = [6, 0], sizes = [1, 16], strides = [1, 1]} : vector<10x64xf32> to vector<1x16xf32>
    %14 = vector.extract_strided_slice %6 {offsets = [7, 0], sizes = [1, 16], strides = [1, 1]} : vector<10x64xf32> to vector<1x16xf32>
    %15 = vector.extract_strided_slice %6 {offsets = [8, 0], sizes = [1, 16], strides = [1, 1]} : vector<10x64xf32> to vector<1x16xf32>
    %16 = vector.extract_strided_slice %6 {offsets = [9, 0], sizes = [1, 16], strides = [1, 1]} : vector<10x64xf32> to vector<1x16xf32>
    %cst = arith.constant dense<0.000000e+00> : vector<8xf32>
    %17 = vector.multi_reduction <add>, %4, %cst [1] : vector<8x32xf32> to vector<8xf32>
    %18 = vector.shape_cast %17 : vector<8xf32> to vector<8x1xf32>
    %cst_6 = arith.constant 3.200000e+01 : f32
    %19 = vector.broadcast %cst_6 : f32 to vector<8x1xf32>
    %20 = arith.divf %18, %19 : vector<8x1xf32>
    %21 = vector.broadcast %20 : vector<8x1xf32> to vector<8x32xf32>
    %22 = arith.subf %4, %21 : vector<8x32xf32>
    %23 = arith.mulf %22, %22 : vector<8x32xf32>
    %cst_7 = arith.constant dense<0.000000e+00> : vector<8xf32>
    %24 = vector.multi_reduction <add>, %23, %cst_7 [1] : vector<8x32xf32> to vector<8xf32>
    %25 = vector.shape_cast %24 : vector<8xf32> to vector<8x1xf32>
    %cst_8 = arith.constant 3.200000e+01 : f32
    %26 = vector.broadcast %cst_8 : f32 to vector<8x1xf32>
    %27 = arith.divf %25, %26 : vector<8x1xf32>
    %cst_9 = arith.constant 9.99999974E-6 : f32
    %28 = vector.broadcast %cst_9 : f32 to vector<8x1xf32>
    %29 = arith.addf %27, %28 : vector<8x1xf32>
    %30 = math.rsqrt %29 : vector<8x1xf32>
    %31 = vector.broadcast %30 : vector<8x1xf32> to vector<8x32xf32>
    %32 = arith.mulf %22, %31 : vector<8x32xf32>
    %33 = vector.broadcast %7 : vector<1x32xf32> to vector<8x32xf32>
    %34 = arith.mulf %32, %33 : vector<8x32xf32>
    %35 = vector.broadcast %8 : vector<1x32xf32> to vector<8x32xf32>
    %36 = arith.addf %34, %35 : vector<8x32xf32>
    %37 = arith.truncf %36 : vector<8x32xf32> to vector<8x32xbf16>
    %c0_10 = arith.constant 0 : index
    %c0_11 = arith.constant 0 : index
    %c0_12 = arith.constant 0 : index
    %38 = vector.load %arg5[%c0_10, %c0_11, %c0_12] : memref<1x32x64xbf16, #tpu.memory_space<vmem>>, vector<1x32x64xbf16>
    %39 = vector.shape_cast %38 : vector<1x32x64xbf16> to vector<32x64xbf16>
    %cst_13 = arith.constant dense<0.000000e+00> : vector<8x64xf32>
    %40 = tpu.matmul %37, %39, %cst_13 {dimension_numbers = #tpu.dot_dimension_numbers<[1], [0], [0], [1], [0, 0, 1, 1], [], []>} : vector<8x32xbf16>, vector<32x64xbf16>, vector<8x64xf32> -> vector<8x64xf32>
    %41 = vector.broadcast %10 : vector<1x64xf32> to vector<8x64xf32>
    %42 = arith.addf %40, %41 : vector<8x64xf32>
    %c0_14 = arith.constant 0 : index
    %c0_15 = arith.constant 0 : index
    %c0_16 = arith.constant 0 : index
    %43 = vector.load %arg6[%c0_14, %c0_15, %c0_16] : memref<1x32x64xbf16, #tpu.memory_space<vmem>>, vector<1x32x64xbf16>
    %44 = vector.shape_cast %43 : vector<1x32x64xbf16> to vector<32x64xbf16>
    %cst_17 = arith.constant dense<0.000000e+00> : vector<8x64xf32>
    %45 = tpu.matmul %37, %44, %cst_17 {dimension_numbers = #tpu.dot_dimension_numbers<[1], [0], [0], [1], [0, 0, 1, 1], [], []>} : vector<8x32xbf16>, vector<32x64xbf16>, vector<8x64xf32> -> vector<8x64xf32>
    %46 = vector.broadcast %11 : vector<1x64xf32> to vector<8x64xf32>
    %47 = arith.addf %45, %46 : vector<8x64xf32>
    %c0_18 = arith.constant 0 : index
    %c0_19 = arith.constant 0 : index
    %c0_20 = arith.constant 0 : index
    %48 = vector.load %arg7[%c0_18, %c0_19, %c0_20] : memref<1x32x16xbf16, #tpu.memory_space<vmem>>, vector<1x32x16xbf16>
    %49 = vector.shape_cast %48 : vector<1x32x16xbf16> to vector<32x16xbf16>
    %cst_21 = arith.constant dense<0.000000e+00> : vector<8x16xf32>
    %50 = tpu.matmul %37, %49, %cst_21 {dimension_numbers = #tpu.dot_dimension_numbers<[1], [0], [0], [1], [0, 0, 1, 1], [], []>} : vector<8x32xbf16>, vector<32x16xbf16>, vector<8x16xf32> -> vector<8x16xf32>
    %51 = vector.broadcast %12 : vector<1x16xf32> to vector<8x16xf32>
    %52 = arith.addf %50, %51 : vector<8x16xf32>
    %53 = arith.negf %42 : vector<8x64xf32>
    %54 = math.exp %53 : vector<8x64xf32>
    %cst_22 = arith.constant 1.000000e+00 : f32
    %55 = vector.broadcast %cst_22 : f32 to vector<8x64xf32>
    %56 = arith.addf %55, %54 : vector<8x64xf32>
    %57 = arith.divf %55, %56 : vector<8x64xf32>
    %58 = arith.mulf %42, %57 : vector<8x64xf32>
    %59 = arith.negf %47 : vector<8x64xf32>
    %60 = math.exp %59 : vector<8x64xf32>
    %cst_23 = arith.constant 1.000000e+00 : f32
    %61 = vector.broadcast %cst_23 : f32 to vector<8x64xf32>
    %62 = arith.addf %61, %60 : vector<8x64xf32>
    %63 = arith.divf %61, %62 : vector<8x64xf32>
    %64 = arith.mulf %47, %63 : vector<8x64xf32>
    %65 = arith.negf %52 : vector<8x16xf32>
    %66 = math.exp %65 : vector<8x16xf32>
    %cst_24 = arith.constant 1.000000e+00 : f32
    %67 = vector.broadcast %cst_24 : f32 to vector<8x16xf32>
    %68 = arith.addf %67, %66 : vector<8x16xf32>
    %69 = arith.divf %67, %68 : vector<8x16xf32>
    %70 = arith.mulf %52, %69 : vector<8x16xf32>
    %71 = vector.broadcast %13 : vector<1x16xf32> to vector<8x16xf32>
    %72 = arith.mulf %70, %71 : vector<8x16xf32>
    %73 = vector.broadcast %15 : vector<1x16xf32> to vector<8x16xf32>
    %74 = arith.addf %72, %73 : vector<8x16xf32>
    %75 = vector.broadcast %14 : vector<1x16xf32> to vector<8x16xf32>
    %76 = arith.mulf %70, %75 : vector<8x16xf32>
    %77 = vector.broadcast %16 : vector<1x16xf32> to vector<8x16xf32>
    %78 = arith.addf %76, %77 : vector<8x16xf32>
    %c0_25 = arith.constant 0 : index
    %c0_26 = arith.constant 0 : index
    %c0_27 = arith.constant 0 : index
    %79 = vector.load %arg4[%c0_25, %c0_26, %c0_27] : memref<2x8x8xf32, #tpu.memory_space<vmem>>, vector<1x8x8xf32>
    %80 = vector.shape_cast %79 : vector<1x8x8xf32> to vector<8x8xf32>
    %c1 = arith.constant 1 : index
    %c0_28 = arith.constant 0 : index
    %c0_29 = arith.constant 0 : index
    %81 = vector.load %arg4[%c1, %c0_28, %c0_29] : memref<2x8x8xf32, #tpu.memory_space<vmem>>, vector<1x8x8xf32>
    %82 = vector.shape_cast %81 : vector<1x8x8xf32> to vector<8x8xf32>
    %83 = vector.extract_strided_slice %74 {offsets = [0, 0], sizes = [8, 8], strides = [1, 1]} : vector<8x16xf32> to vector<8x8xf32>
    %84 = vector.extract_strided_slice %74 {offsets = [0, 8], sizes = [8, 8], strides = [1, 1]} : vector<8x16xf32> to vector<8x8xf32>
    %85 = arith.mulf %83, %80 : vector<8x8xf32>
    %86 = arith.mulf %84, %82 : vector<8x8xf32>
    %87 = arith.subf %85, %86 : vector<8x8xf32>
    %88 = arith.mulf %84, %80 : vector<8x8xf32>
    %89 = arith.mulf %83, %82 : vector<8x8xf32>
    %90 = arith.addf %88, %89 : vector<8x8xf32>
    %91 = vector.extract_strided_slice %78 {offsets = [0, 0], sizes = [8, 8], strides = [1, 1]} : vector<8x16xf32> to vector<8x8xf32>
    %92 = vector.extract_strided_slice %78 {offsets = [0, 8], sizes = [8, 8], strides = [1, 1]} : vector<8x16xf32> to vector<8x8xf32>
    %93 = arith.mulf %91, %80 : vector<8x8xf32>
    %94 = arith.mulf %92, %82 : vector<8x8xf32>
    %95 = arith.subf %93, %94 : vector<8x8xf32>
    %96 = arith.mulf %92, %80 : vector<8x8xf32>
    %97 = arith.mulf %91, %82 : vector<8x8xf32>
    %98 = arith.addf %96, %97 : vector<8x8xf32>
    %99 = arith.truncf %87 : vector<8x8xf32> to vector<8x8xbf16>
    %100 = arith.truncf %95 : vector<8x8xf32> to vector<8x8xbf16>
    %cst_30 = arith.constant dense<0.000000e+00> : vector<8x8xf32>
    %101 = tpu.matmul %99, %100, %cst_30 {dimension_numbers = #tpu.dot_dimension_numbers<[1], [1], [0], [0], [0, 0, 1, 0], [], []>} : vector<8x8xbf16>, vector<8x8xbf16>, vector<8x8xf32> -> vector<8x8xf32>
    %102 = arith.truncf %90 : vector<8x8xf32> to vector<8x8xbf16>
    %103 = arith.truncf %98 : vector<8x8xf32> to vector<8x8xbf16>
    %cst_31 = arith.constant dense<0.000000e+00> : vector<8x8xf32>
    %104 = tpu.matmul %102, %103, %cst_31 {dimension_numbers = #tpu.dot_dimension_numbers<[1], [1], [0], [0], [0, 0, 1, 0], [], []>} : vector<8x8xbf16>, vector<8x8xbf16>, vector<8x8xf32> -> vector<8x8xf32>
    %105 = arith.addf %101, %104 : vector<8x8xf32>
    %c0_32 = arith.constant 0 : index
    %c0_33 = arith.constant 0 : index
    %c0_34 = arith.constant 0 : index
    %106 = vector.load %arg10[%c0_32, %c0_33, %c0_34] : memref<1x8x8xf32, #tpu.memory_space<vmem>>, vector<1x8x8xf32>
    %107 = vector.shape_cast %106 : vector<1x8x8xf32> to vector<8x8xf32>
    %108 = arith.addf %105, %107 : vector<8x8xf32>
    %cst_35 = arith.constant 0.000000e+00 : f32
    %109 = vector.broadcast %cst_35 : f32 to vector<8x8xf32>
    %110 = arith.maximumf %108, %109 : vector<8x8xf32>
    %111 = arith.mulf %110, %110 : vector<8x8xf32>
    %c0_36 = arith.constant 0 : index
    %c0_37 = arith.constant 0 : index
    %c0_38 = arith.constant 0 : index
    %112 = vector.load %arg3[%c0_36, %c0_37, %c0_38] : memref<1x1x8xf32, #tpu.memory_space<vmem>>, vector<1x1x8xf32>
    %113 = vector.shape_cast %112 : vector<1x1x8xf32> to vector<1x8xf32>
    %114 = tpu.transpose %113, [1, 0] : vector<1x8xf32> -> vector<8x1xf32>
    %115 = vector.broadcast %114 : vector<8x1xf32> to vector<8x64xf32>
    %116 = arith.mulf %64, %115 : vector<8x64xf32>
    %117 = arith.truncf %116 : vector<8x64xf32> to vector<8x64xbf16>
    %118 = arith.truncf %111 : vector<8x8xf32> to vector<8x8xbf16>
    %cst_39 = arith.constant dense<0.000000e+00> : vector<8x64xf32>
    %119 = tpu.matmul %118, %117, %cst_39 {dimension_numbers = #tpu.dot_dimension_numbers<[1], [0], [0], [1], [0, 0, 1, 1], [], []>} : vector<8x8xbf16>, vector<8x64xbf16>, vector<8x64xf32> -> vector<8x64xf32>
    %120 = vector.broadcast %114 : vector<8x1xf32> to vector<8x64xf32>
    %121 = arith.mulf %119, %120 : vector<8x64xf32>
    %122 = arith.mulf %58, %121 : vector<8x64xf32>
    %123 = arith.truncf %122 : vector<8x64xf32> to vector<8x64xbf16>
    %c0_40 = arith.constant 0 : index
    %c0_41 = arith.constant 0 : index
    %c0_42 = arith.constant 0 : index
    %124 = vector.load %arg8[%c0_40, %c0_41, %c0_42] : memref<1x64x32xbf16, #tpu.memory_space<vmem>>, vector<1x64x32xbf16>
    %125 = vector.shape_cast %124 : vector<1x64x32xbf16> to vector<64x32xbf16>
    %cst_43 = arith.constant dense<0.000000e+00> : vector<8x32xf32>
    %126 = tpu.matmul %123, %125, %cst_43 {dimension_numbers = #tpu.dot_dimension_numbers<[1], [0], [0], [1], [0, 0, 1, 1], [], []>} : vector<8x64xbf16>, vector<64x32xbf16>, vector<8x32xf32> -> vector<8x32xf32>
    %127 = vector.broadcast %9 : vector<1x32xf32> to vector<8x32xf32>
    %128 = arith.addf %126, %127 : vector<8x32xf32>
    %129 = arith.addf %128, %4 : vector<8x32xf32>
    %c0_44 = arith.constant 0 : index
    %c0_45 = arith.constant 0 : index
    %c0_46 = arith.constant 0 : index
    %130 = vector.load %arg11[%c0_44, %c0_45, %c0_46] : memref<1x8x32xf32, #tpu.memory_space<vmem>>, vector<1x8x32xf32>
    %131 = vector.shape_cast %130 : vector<1x8x32xf32> to vector<8x32xf32>
    %132 = vector.shape_cast %129 : vector<8x32xf32> to vector<1x8x32xf32>
    tpu.vector_store %arg11[%c0_44, %c0_45, %c0_46], %132 {strides = array<i32>} : memref<1x8x32xf32, #tpu.memory_space<vmem>>, vector<1x8x32xf32>,
    return
  }
  func.func @transform_0(%arg0: i32, %arg1: i32) -> (i32, i32, i32) {
    %c0_i32 = arith.constant 0 : i32
    %c0_i32_0 = arith.constant 0 : i32
    %c0_i32_1 = arith.constant 0 : i32
    return %arg0, %c0_i32, %c0_i32_0 : i32, i32, i32
  }
  func.func @transform_1(%arg0: i32, %arg1: i32) -> (i32, i32, i32) {
    %c0_i32 = arith.constant 0 : i32
    %c0_i32_0 = arith.constant 0 : i32
    %c0_i32_1 = arith.constant 0 : i32
    return %arg0, %c0_i32, %c0_i32_0 : i32, i32, i32
  }
  func.func @transform_2(%arg0: i32, %arg1: i32) -> (i32, i32, i32) {
    %c0_i32 = arith.constant 0 : i32
    %c0_i32_0 = arith.constant 0 : i32
    %c0_i32_1 = arith.constant 0 : i32
    %c0_i32_2 = arith.constant 0 : i32
    return %c0_i32, %c0_i32_0, %c0_i32_1 : i32, i32, i32
  }
  func.func @transform_3(%arg0: i32, %arg1: i32) -> (i32, i32, i32) {
    %c0_i32 = arith.constant 0 : i32
    %c0_i32_0 = arith.constant 0 : i32
    %c0_i32_1 = arith.constant 0 : i32
    return %arg1, %c0_i32, %c0_i32_0 : i32, i32, i32
  }
  func.func @transform_4(%arg0: i32, %arg1: i32) -> (i32, i32, i32) {
    %c0_i32 = arith.constant 0 : i32
    %c0_i32_0 = arith.constant 0 : i32
    %c0_i32_1 = arith.constant 0 : i32
    return %arg1, %c0_i32, %c0_i32_0 : i32, i32, i32
  }
  func.func @transform_5(%arg0: i32, %arg1: i32) -> (i32, i32, i32) {
    %c0_i32 = arith.constant 0 : i32
    %c0_i32_0 = arith.constant 0 : i32
    %c0_i32_1 = arith.constant 0 : i32
    return %arg1, %c0_i32, %c0_i32_0 : i32, i32, i32
  }
  func.func @transform_6(%arg0: i32, %arg1: i32) -> (i32, i32, i32) {
    %c0_i32 = arith.constant 0 : i32
    %c0_i32_0 = arith.constant 0 : i32
    %c0_i32_1 = arith.constant 0 : i32
    return %arg1, %c0_i32, %c0_i32_0 : i32, i32, i32
  }
  func.func @transform_7(%arg0: i32, %arg1: i32) -> (i32, i32, i32) {
    %c0_i32 = arith.constant 0 : i32
    %c0_i32_0 = arith.constant 0 : i32
    %c0_i32_1 = arith.constant 0 : i32
    return %arg1, %c0_i32, %c0_i32_0 : i32, i32, i32
  }
  func.func @transform_8(%arg0: i32, %arg1: i32) -> (i32, i32, i32) {
    %c0_i32 = arith.constant 0 : i32
    %c0_i32_0 = arith.constant 0 : i32
    %c0_i32_1 = arith.constant 0 : i32
    return %arg1, %c0_i32, %c0_i32_0 : i32, i32, i32
  }
  func.func @transform_9(%arg0: i32, %arg1: i32) -> (i32, i32, i32) {
    %c0_i32 = arith.constant 0 : i32
    %c0_i32_0 = arith.constant 0 : i32
    %c0_i32_1 = arith.constant 0 : i32
    return %arg0, %c0_i32, %c0_i32_0 : i32, i32, i32
  }
}

</mosaic_0001>

<bundles_post_ra>
// kernel: flash_quad_encoder_pallas.1
= control target key start
LH: loop header
LB: loop body
LE: loop exit
PB: predicated region body
PF: predicated region fallthrough
CT: control target
= control target key end

     0   :  { %s1878_s0 = inlined_call_operand.vmem [shape: f32[2,8,32], index: 0, kind: input, shape index: {}]   ;;  %s1879_s1 = inlined_call_operand.vmem [shape: f32[2,1,8], index: 1, kind: input, shape index: {}]   ;;  %s1880_s2 = inlined_call_operand.vmem [shape: f32[2,8,8], index: 2, kind: input, shape index: {}]   ;;  %s1881_s3 = inlined_call_operand.vmem [shape: bf16[2,32,64], index: 3, kind: input, shape index: {}]   ;;  %s1882_s4 = inlined_call_operand.vmem [shape: bf16[2,32,64], index: 4, kind: input, shape index: {}]   ;;  %s1883_s5 = inlined_call_operand.vmem [shape: bf16[2,32,16], index: 5, kind: input, shape index: {}]   ;;  %s1884_s6 = inlined_call_operand.vmem [shape: bf16[2,64,32], index: 6, kind: input, shape index: {}]   ;;  %s1885_s7 = inlined_call_operand.vmem [shape: f32[2,10,64], index: 7, kind: input, shape index: {}]   ;;  %s1886_s8 = inlined_call_operand.vmem [shape: f32[2,8,8], index: 8, kind: input, shape index: {}]   ;;  %s1887_s9 = inlined_call_operand.hbm [shape: f32[2,8,32], index: 9, kind: output, shape index: {}]  }
   0x1   :  { %1900 = sst [smem:[#allocation15_spill]] %s1878_s0 }
   0x2   :  { %1901 = sst [smem:[#allocation16_spill]] %s1881_s3 }
   0x3   :  { %1902 = sst [smem:[#allocation17_spill]] %s1887_s9 }
   0x4   :  { %14 = vsyncpa [#allocation3], 0 }
   0x5   :  { %16 = vsyncpa [#allocation3 + $0x1], 0  ;;  %s1590_s30 = smov 0   ;;  %s1592_s10 = smov 0  }
   0x6   :  { %s1594_s11 = smov 0   ;;  %s1596_s12 = smov 0  }
   0x7   :  { %s1598_s13 = smov 0   ;;  %s1600_s14 = smov 0  }
   0x8   :  { %s1602_s15 = smov 0   ;;  %s1604_s16 = smov 0  }
   0x9 LB: > { %1903 = sst [smem:[#allocation5_spill]] %s1504_s30  ;;  %s1216_s17 = sadd.s32 4294967295, %s1532_s16   ;;  %s1532_s16 = sphi %s1604_s16, %s22_s16   ;;  %s1528_s15 = sphi %s1602_s15, %s1929_s15   ;;  %s1524_s14 = sphi %s1600_s14, %s1928_s14   ;;  %s1520_s13 = sphi %s1598_s13, %s1927_s13   ;;  %s1516_s12 = sphi %s1596_s12, %s1926_s12   ;;  %s1512_s11 = sphi %s1594_s11, %s1925_s11   ;;  %s1508_s10 = sphi %s1592_s10, %s1931_s10   ;;  %s1504_s30 = sphi %s1590_s30, %s1930_s30  }
   0xa   : > { %1904 = sst [smem:[#allocation6_spill]] %s1512_s11  ;;  %s1217_s18 = sadd.s32 4294967294, %s1532_s16  }
   0xb   : > { %1905 = sst [smem:[#allocation7_spill]] %s1524_s14  ;;  %s31_s19 = sadd.s32 1, %s1524_s14 }
   0xc   : > { %1906 = sst [smem:[#allocation8_spill]] %s1528_s15  ;;  %p32_p0 = scmp.ge.s32.totalorder %s31_s19, 2 }
   0xd   : > { %1907 = sst [smem:[#allocation9_spill]] %s1532_s16  ;;  %s34_s20 = sadd.s32 1, %s1528_s15 }
   0xe   : > { %p280_p1 = scmp.ne.s32.totalorder %s1512_s11, %s1508_s10  ;;  %p281_p2 = scmp.eq.s32.totalorder %s1216_s17, 3 }
   0xf   : > { %s1933_s19 = smov (%p32_p0, %s31_s19), 0  ;;  %s1935_s20 = smov (!%p32_p0, %s34_s20), %s1528_s15 }
  0x10   : > { %1908 = sst [smem:[#allocation10_spill]] %s1933_s19  ;;  %p1639_p3 = por %p281_p2, %p280_p1 }
  0x11   : > { %p286_p4 = scmp.ne.s32.totalorder %s1508_s10, %s1504_s30  ;;  %p36_p5 = scmp.ge.s32.totalorder %s1935_s20, 2 }
  0x12   : > { %s1909_s21 = scalar_select %p1639_p3, 1, 0 }
  0x13   : > { %p287_p6 = scmp.eq.s32.totalorder %s1217_s18, 3  ;;  %p1220_p7 = scmp.ge.s32.totalorder %s1532_s16, 1 }
  0x14   : > { %1910 = sst [smem:[#allocation11_spill]] %s1909_s21  ;;  %p368_p8 = scmp.lt.s32.totalorder %s1532_s16, 5 }
  0x15   : > { %s1937_s20 = smov (%p36_p5, %s1935_s20), 0  ;;  %p1649_p9 = por %p287_p6, %p286_p4 }
  0x16   : > { %1911 = sst [smem:[#allocation12_spill]] %s1937_s20  ;;  %p369_p10 = pnand %p1220_p7, %p368_p8 }
  0x17   : > { %s1912_s22 = scalar_select %p1649_p9, 1, 0 }
  0x18   : > { %s267_s23 = ssub.s32 %s1528_s15, %s1937_s20  ;;  %s270_s24 = sadd.s32 1, %s1512_s11 }
  0x19   : > { %1913 = sst [smem:[#allocation13_spill]] %s1912_s22  ;;  %p268_p11 = scmp.eq.s32.totalorder %s267_s23, 0 }
  0x1a   : > { %372 = sbr.rel (%p369_p10) target bundleno = 1454 (0x5ae), region = 56  ;;  %s1892_s26 = sand.u32 (!%p369_p10), 1, %s1508_s10  }
  0x1b   : > { %s1657_s25 = scalar_select %p268_p11, %s1512_s11, %s270_s24  }
  0x1c   : > { %p435_p12 = scmp.lt.s32.totalorder (!%p369_p10), %s1520_s13, 1  ;;  %s1221_s27 = sshll.u32 (!%p369_p10), %s1892_s26, 3 }
  0x1d   : > { %1914 = sst [smem:[#allocation14_spill]] %s1657_s25  ;;  %p442_p13 = scmp.lt.s32.totalorder (!%p369_p10), %s1516_s12, 1 }
  0x1e   : > { %s1915_s0 = sld [smem:[#allocation15_spill]] (!%p369_p10)  ;;  %s1706_s9 = scalar_lea.vmem (!%p369_p10), [#allocation2], %s1221_s27 }
  0x1f   : > { %s1665_s28 = scalar_select %p435_p12, %s1520_s13, 1 }
  0x20   : > { %s443_s29 = scalar_select %p442_p13, %s1516_s12, 1 }
  0x21   : > { %s1222_s17 = sshll.u32 %s1665_s28, 3  ;;  %s1916_s3 = sld [smem:[#allocation16_spill]] }
  0x22   : > { %s1260_s14 = sshll.u32 %s443_s29, 4  ;;  %s1263_s23 = sshll.u32 %s443_s29, 5 }
  0x23   : > { %s1684_s16 = scalar_lea.vmem %s1882_s4, %s1260_s14  ;;  %s1689_s18 = scalar_lea.vmem %s1883_s5, %s1260_s14 }
  0x24   : > { %s438_s15 = scalar_lea.vmem %s1915_s0, %s1222_s17  ;;  %s1694_s20 = scalar_lea.vmem %s1884_s6, %s1263_s23 }
  0x25   : > { %s1699_s25 = scalar_lea.vmem %s1885_s7, %s1260_s14  ;;  %s1233_s0 = sshll.u32 %s443_s29, 3 }
  0x26   : > { %p1234_p0 = scmp.ne.s32.totalorder %s1516_s12, 0 }
  0x27   : > { %s1679_s26 = scalar_lea.vmem %s1916_s3, %s1260_s14  ;;  %s1704_s3 = scalar_lea.vmem %s1886_s8, %s1233_s0 }
  0x28   : > { %475 = sbr.rel (%p1234_p0) target bundleno = 47 (0x2f), region = 60 }
  0x2d   : > { %v476_v0 = vld [vmem:[%s438_s15] sm:$0xff]  ;;  %vm477_vm0 = vcmask 261120  }
  0x2e   : > { %478 = vst.msk [vmem:[%s1706_s9] sm:$0xff] %vm477_vm0, %v476_v0 }
  0x2f PF: > { %vm482_vm1 = vcmask 261120   ;;  %v1416_v8 = vld [vmem:[%s1679_s26 + $0x8] sm:$0xff]   ;;  %v1534_v10 = vmov 0.0   ;;  %v1418_v11 = vld [vmem:[%s1679_s26] sm:$0xff]   ;;  %vm1535_vm2 = vmmov 0   ;;  %s1536_s14 = smov 8   ;;  %v497_v18 = vlaneseq  ;;  %s1917_s29 = scalar_lea.vmem %s1879_s1, %s1665_s28 }
  0x30   : > { %v1417_v9 = vld [vmem:[%s1689_s18 + $0x8] sm:$0xff]   ;;  %1285 = vmatprep.subr.bf16.mxu1 %v1534_v10  ;;  %1301 = vmatprep.subr.bf16.mxu0 %v1534_v10  ;;  %v1419_v12 = vld [vmem:[%s1689_s18] sm:$0xff]   ;;  %vm781_vm3 = vcmask 64512   ;;  %vm922_vm4 = vcmask 1043456   ;;  %vm1005_vm5 = vcmask 523264   ;;  %s1257_s28 = sshll.u32 %s1520_s13, 7 }
  0x31   : > { %1286 = vmatpush3.bf16.msra.mxu1 %v1416_v8  ;;  %1302 = vmatpush3.bf16.msra.mxu0 %v1417_v9  ;;  %v1734_v13 = vld [vmem:[%s1880_s2 + $0x8] sm:$0xff]  ;;  %v1741_v14 = vld [vmem:[%s1880_s2] sm:$0xff]  ;;  %v1745_v19 = vshrl.u32 %v497_v18, 7  ;;  %v1538_v9 = vmov 0   ;;  %s1065_s24 = sshll.u32 %s1706_s9, 4  ;;  %s1919_s19 = sld [smem:[#allocation17_spill]]  ;;  %s1824_s24 = int_to_ptr.vmem [resolvable:$true] %s1065_s24 }
  0x32   : > { %1287 = vmatprep.subr.bf16.mxu1 %v1534_v10  ;;  %1303 = vmatprep.subr.bf16.mxu0 %v1534_v10  ;;  %v1749_v21 = vld [vmem:[%s1699_s25] sm:$0xff]  ;;  %v1420_v29 = vld [vmem:[%s1684_s16 + $0x8] sm:$0xff]   ;;  %s1920_s13 = sand.u32 1, %s1508_s10   ;;  %s1440_s11 = scalar_lea.vmem %s1824_s24, 128 }
  0x33   : > { %1289 = vmatprep.mubr.msk.bf16.mxu1 %vm1535_vm2, %v1534_v10  ;;  %1305 = vmatprep.mubr.msk.bf16.mxu0 %vm1535_vm2, %v1534_v10  ;;  %v499_v20 = vsub.s32 0, %v1745_v19  ;;  %v504_v22 = vsub.s32 1, %v1745_v19  ;;  %v1421_v31 = vld [vmem:[%s1684_s16] sm:$0xff]   ;;  %v637_v32 = vsub.s32 5, %v1745_v19  ;;  %v714_v50 = vsub.s32 6, %v1745_v19  ;;  %s1537_s16 = smov 120   ;;  %p1441_p1 = scmp.ne.s32.totalorder %s1824_s24, %s1440_s11 }
  0x34   : > { %737 = vrot.lane.b32.xlu1 %v1734_v13, %s1536_s14  ;;  %v724_v51 = vsub.s32 7, %v1745_v19  ;;  %v481_v52 = vld [vmem:[%s1699_s25 + $0x8] sm:$0x3]  ;;  %1415 = vset.pattern.permute.xlu0 %v1538_v9  ;;  %s1052_s17 = scalar_lea.sflag [#allocation3], %s1920_s13  ;;  %s1539_s25 = smov [#allocation2]  }
  0x35   : > { %v1711_v1 = vld [vmem:[%s1706_s9] sm:$0xff]  ;;  %1288 = vmatpush3.bf16.msra.mxu1 %v1418_v11  ;;  %1304 = vmatpush3.bf16.msra.mxu0 %v1419_v12  ;;  %v500_v23 = vrot.slane %v1749_v21, %v499_v20  ;;  %v505_v26 = vrot.slane %v1749_v21, %v504_v22  ;;  %v638_v33 = vrot.slane %v1749_v21, %v637_v32  ;;  %p1442_p2 = pnand %p1441_p1, %p1639_p3  ;;  %s1444_s30 = sshll.u32 %s1539_s25, 4  ;;  %s1445_s30 = int_to_ptr.vmem [resolvable:$false] %s1444_s30 }
  0x36   : > { %v483_v2 = vsel %vm482_vm1, %v1711_v1, 0.0  ;;  %1293 = vmatprep.subr.bf16.mxu1 %v1534_v10  ;;  %1315 = vmatprep.subr.bf16.mxu0 %v1534_v10  ;;  %v715_v53 = vrot.slane %v1749_v21, %v714_v50  ;;  %v725_v54 = vrot.slane %v1749_v21, %v724_v51  ;;  %v720_v57 = vrot.slane %v481_v52, %v499_v20  ;;  %v874_v50 = vld [vmem:[%s1704_s3] sm:$0xff]  ;;  %s1446_s22 = scalar_lea.vmem %s1445_s30, 256  ;;  %p1447_p5 = scmp.lt.s32.totalorder %s1824_s24, %s1445_s30 }
  0x37   : > { %484 = vadd.xlane.f32.xlu0 %v483_v2  ;;  %v730_v58 = vrot.slane %v481_v52, %v504_v22  ;;  %p1443_p4 = pneg %p1442_p2  ;;  %p1448_p6 = scmp.lt.s32.totalorder %s1446_s22, %s1440_s11 }
  0x38   : > { %747 = vrot.lane.b32.xlu1 %v1741_v14, %s1536_s14 }
  0x39   : > { %p1449_p7 = por %p1448_p6, %p1447_p5 }
  0x3b   : > { %p1450_p8 = pnand %p1449_p7, %p1443_p4 }
  0xa6   : > { %v738_v2 = vpop.permute.xlu1 %737 }
  0xc0   : > { %v485_v3 = vpop.xlane.xlu0 %484 }
  0xc1   : > { %v487_v4 = vmul.f32 0.03125, %v485_v3 }
  0xc3   : > { %v488_v5 = vsub.f32 %v1711_v1, %v487_v4  ;;  %v748_v4 = vpop.permute.xlu1 %747 }
  0xc5   : > { %v489_v6 = vmul.f32 %v488_v5, %v488_v5 }
  0xc7   : > { %v490_v7 = vsel %vm482_vm1, %v489_v6, 0.0 }
  0xc8   : > { %491 = vadd.xlane.f32.xlu0 %v490_v7 }
 0x151   : > { %v492_v15 = vpop.xlane.xlu0 %491 }
 0x152   : > { %v493_v16 = vmul.f32 0.03125, %v492_v15 }
 0x154   : > { %v494_v17 = vadd.f32 1e-05, %v493_v16 }
 0x156   : > { %1426 = vrsqrt.f32 %v494_v17 }
 0x163   : > { %v1427_v24 = vpop.eup %1426 }
 0x164   : > { %v496_v25 = vmul.f32 %v1427_v24, %v488_v5  ;;  %v878_v24 = vld [vmem:[%s1917_s29] sm:$0x1] }
 0x166   : > { %v501_v27 = vmul.f32 %v500_v23, %v496_v25 }
 0x168   : > { %v506_v28 = vadd.f32 %v505_v26, %v501_v27 }
 0x16a   : > { %v507_v30 = vpack.c.bf16 %v506_v28, %v506_v28 }
 0x16c   : > { %1290 = vmatmul.mubr.msk.bf16.vlgmr.msra.gmra.mxu1 %vm482_vm1, %v507_v30  ;;  %1306 = vmatmul.mubr.msk.bf16.vlgmr.msra.gmra.mxu0 %vm482_vm1, %v507_v30 }
 0x16d   : > { %1294 = vmatpush3.bf16.msra.mxu1 %v1420_v29  ;;  %1297 = vmatprep.mubr.msk.bf16.mxu1 %vm1535_vm2, %v1534_v10 }
 0x16e   : > { %1295 = vmatprep.subr.bf16.mxu1 %v1534_v10  ;;  %1317 = vmatprep.mubr.msk.bf16.mxu0 %vm1535_vm2, %v1534_v10 }
 0x171   : > { %1296 = vmatpush3.bf16.msra.mxu1 %v1421_v31 }
 0x172   : > { %1309 = vmatprep.subr.bf16.mxu1 %v1534_v10 }
 0x174   : > { %1298 = vmatmul.mubr.msk.bf16.vlgmr.msra.gmra.mxu1 %vm482_vm1, %v507_v30 }
 0x175   : > { %1311 = vmatprep.mubr.msk.bf16.mxu1 %vm1535_vm2, %v1534_v10 }
 0x22c   : > { %v1769_v34 = vpop.f32.mrf.mxu1  ;;  %v685_v35 = vpop.f32.mrf.mxu0 }
 0x22d   : > { %v686_v36 = vadd.f32 %v685_v35, %v638_v33  ;;  %v1422_v33 = vld [vmem:[%s1694_s20 + $0x18] sm:$0xff]   ;;  %v577_v35 = vsub.s32 4, %v1745_v19 }
 0x22e   : > { %v1291_v37 = vpop.f32.mrf.mxu1  ;;  %v1307_v38 = vpop.f32.mrf.mxu0 }
 0x22f   : > { %v1246_v39 = vmul.f32 -1.442695, %v686_v36 }
 0x230   : > { %v568_v40 = vpop.f32.mrf.mxu1  ;;  %v688_v41 = vpop.f32.mrf.mxu0 }
 0x231   : > { %1428 = vpow2.f32 %v1246_v39 }
 0x232   : > { %v1292_v42 = vpop.f32.mrf.mxu1  ;;  %v1308_v43 = vpop.f32.mrf.mxu0 }
 0x234   : > { %v1771_v44 = vpop.f32.mrf.mxu1 }
 0x236   : > { %v1299_v45 = vpop.f32.mrf.mxu1 }
 0x238   : > { %v628_v46 = vpop.f32.mrf.mxu1 }
 0x23a   : > { %v1300_v47 = vpop.f32.mrf.mxu1 }
 0x23e   : > { %v1429_v48 = vpop.eup %1428 }
 0x23f   : > { %v708_v49 = vadd.f32 1.0, %v1429_v48 }
 0x241   : > { %1430 = vrcp.f32 %v708_v49 }
 0x24e   : > { %v1431_v55 = vpop.eup %1430 }
 0x24f   : > { %v711_v56 = vmul.f32 %v1431_v55, %v686_v36  ;;  %v578_v36 = vrot.slane %v1749_v21, %v577_v35 }
 0x251   : > { %v716_v59 = vmul.f32 %v715_v53, %v711_v56  ;;  %v726_v60 = vmul.f32 %v725_v54, %v711_v56  ;;  %v626_v37 = vadd.f32 %v1771_v44, %v578_v36 }
 0x253   : > { %v721_v61 = vadd.f32 %v720_v57, %v716_v59  ;;  %v731_v62 = vadd.f32 %v730_v58, %v726_v60  ;;  %v1245_v38 = vmul.f32 -1.442695, %v626_v37 }
 0x255   : > { %v765_v63 = vmul.f32 %v1734_v13, %v731_v62  ;;  %v751_v0 = vmul.f32 %v1734_v13, %v721_v61  ;;  %v758_v3 = vmul.f32 %v738_v2, %v731_v62  ;;  %v764_v5 = vmul.f32 %v748_v4, %v731_v62 }
 0x256   : > { %v757_v12 = vmul.f32 %v1741_v14, %v731_v62  ;;  %v750_v15 = vmul.f32 %v748_v4, %v721_v61  ;;  %v740_v17 = vmul.f32 %v738_v2, %v721_v61  ;;  %v735_v27 = vmul.f32 %v1741_v14, %v721_v61  ;;  %v1423_v14 = vld [vmem:[%s1694_s20 + $0x10] sm:$0xff]   ;;  %v1424_v61 = vld [vmem:[%s1694_s20 + $0x8] sm:$0xff]   ;;  %v1425_v62 = vld [vmem:[%s1694_s20] sm:$0xff]   ;;  %s1822_s20 = scalar_lea.hbm %s1919_s19, %s1257_s28 }
 0x257   : > { %767 = vrot.lane.b32.xlu0 %v765_v63, %s1536_s14  ;;  %753 = vrot.lane.b32.xlu1 %v751_v0, %s1536_s14  ;;  %1432 = vpow2.f32 %v1245_v38  ;;  %v514_v63 = vsub.s32 3, %v1745_v19 }
 0x259   : > { %v515_v0 = vrot.slane %v1749_v21, %v514_v63 }
 0x25b   : > { %760 = vrot.lane.b32.xlu1 %v758_v3, %s1537_s16  ;;  %v566_v2 = vadd.f32 %v1769_v34, %v515_v0  ;;  %v979_v34 = vsub.s32 2, %v1745_v19 }
 0x25d   : > { %v1244_v3 = vmul.f32 -1.442695, %v566_v2 }
 0x264   : > { %v1433_v39 = vpop.eup %1432 }
 0x265   : > { %v701_v40 = vadd.f32 1.0, %v1433_v39 }
 0x267   : > { %1434 = vrcp.f32 %v701_v40 }
 0x268   : > { %1436 = vpow2.f32 %v1244_v3 }
 0x274   : > { %v1435_v41 = vpop.eup %1434 }
 0x275   : > { %v704_v42 = vmul.f32 %v1435_v41, %v626_v37  ;;  %v1437_v4 = vpop.eup %1436 }
 0x2c9   : > { %v768_v6 = vpop.permute.xlu0 %767  ;;  %v754_v7 = vpop.permute.xlu1 %753 }
 0x2ca   : > { %v770_v8 = vadd.f32 %v768_v6, %v764_v5  ;;  %v756_v18 = vadd.f32 %v754_v7, %v750_v15  ;;  %v694_v5 = vadd.f32 1.0, %v1437_v4 }
 0x2cc   : > { %v774_v11 = vpack.c.bf16 %v770_v8, %v770_v8  ;;  %v773_v23 = vpack.c.bf16 %v756_v18, %v756_v18  ;;  %1438 = vrcp.f32 %v694_v5 }
 0x2cd   : > { %v761_v13 = vpop.permute.xlu1 %760 }
 0x2ce   : > { %v763_v16 = vsub.f32 %v757_v12, %v761_v13  ;;  %779 = vrot.lane.b32.xlu1 %v774_v11, %s1537_s16 }
 0x2d0   : > { %v772_v20 = vpack.c.bf16 %v763_v16, %v763_v16  ;;  %v980_v16 = vrot.slane %v1749_v21, %v979_v34 }
 0x2d2   : > { %v832_v22 = vsel %vm781_vm3, %v772_v20, 0  ;;  %742 = vrot.lane.b32.xlu1 %v740_v17, %s1537_s16 }
 0x2d3   : > { %1316 = vmatpush3.bf16.xpose.msra.mxu0 %v832_v22 }
 0x2d4   : > { %1327 = vmatprep.subr.bf16.mxu0 %v1534_v10 }
 0x2d6   : > { %776 = vrot.lane.b32.xlu1 %v773_v23, %s1537_s16 }
 0x2d9   : > { %v1439_v6 = vpop.eup %1438 }
 0x2da   : > { %v697_v8 = vmul.f32 %v1439_v6, %v566_v2 }
 0x2ff   : > { %879 = vxpose.xlu1.b32.start.end [1/1] (short) (narrow) %v878_v24, 8 }
 0x340   : > { %v780_v25 = vpop.permute.xlu1 %779 }
 0x341   : > { %v786_v26 = vsel %vm781_vm3, %v780_v25, 0 }
 0x342   : > { %1310 = vmatpush3.bf16.xpose.msra.mxu1 %v786_v26 }
 0x343   : > { %1321 = vmatprep.subr.bf16.mxu1 %v1534_v10 }
 0x344   : > { %v743_v28 = vpop.permute.xlu1 %742 }
 0x345   : > { %v745_v29 = vsub.f32 %v735_v27, %v743_v28 }
 0x347   : > { %v771_v30 = vpack.c.bf16 %v745_v29, %v745_v29 }
 0x348   : > { %v777_v31 = vpop.permute.xlu1 %776 }
 0x349   : > { %1312 = vmatmul.mubr.msk.bf16.vlgmr.msra.gmra.mxu1 %vm781_vm3, %v777_v31  ;;  %1318 = vmatmul.mubr.msk.bf16.vlgmr.msra.gmra.mxu0 %vm781_vm3, %v771_v30 }
 0x34a   : > { %1323 = vmatprep.mubr.msk.bf16.mxu1 %vm1535_vm2, %v1534_v10  ;;  %1335 = vmatprep.mubr.msk.bf16.mxu0 %vm1535_vm2, %v1534_v10 }
 0x34b   : > { %1328 = vmatpush3.bf16.msra.mxu0 %v1422_v33 }
 0x34c   : > { %1329 = vmatprep.subr.bf16.mxu0 %v1534_v10 }
 0x34f   : > { %1330 = vmatpush3.bf16.msra.mxu0 %v1423_v14 }
 0x350   : > { %1331 = vmatprep.subr.bf16.mxu0 %v1534_v10 }
 0x353   : > { %1332 = vmatpush3.bf16.msra.mxu0 %v1424_v61 }
 0x354   : > { %1333 = vmatprep.subr.bf16.mxu0 %v1534_v10 }
 0x357   : > { %1334 = vmatpush3.bf16.msra.mxu0 %v1425_v62 }
 0x37b   : > { %v895_v32 = vpop.trf.xlu1 }
 0x37c   : > { %913 = vperm.xlu0 %1415, %v895_v32  }
 0x3f7   : > { %v914_v43 = vpop.permute.xlu0 %913 }
 0x3f8   : > { %v916_v45 = vmul.f32 %v914_v43, %v704_v42 }
 0x3fa   : > { %v917_v46 = vpack.c.bf16 %v916_v45, %v916_v45 }
 0x3fc   : > { %v924_v47 = vsel %vm922_vm4, %v917_v46, 0 }
 0x3fd   : > { %1322 = vmatpush3.bf16.msra.mxu1 %v924_v47 }
 0x409   : > { %v822_v48 = vpop.f32.mrf.mxu1  ;;  %v868_v49 = vpop.f32.mrf.mxu0 }
 0x40a   : > { %v869_v44 = vadd.f32 %v868_v49, %v822_v48 }
 0x40b   : > { %v1313_v51 = vpop.f32.mrf.mxu1  ;;  %v1319_v52 = vpop.f32.mrf.mxu0 }
 0x40c   : > { %v875_v53 = vadd.f32 %v874_v50, %v869_v44 }
 0x40d   : > { %v825_v54 = vpop.f32.mrf.mxu1  ;;  %v871_v55 = vpop.f32.mrf.mxu0 }
 0x40e   : > { %v876_v56 = vmax.f32 %v875_v53, 0.0 }
 0x40f   : > { %v1314_v57 = vpop.f32.mrf.mxu1  ;;  %v1320_v58 = vpop.f32.mrf.mxu0 }
 0x410   : > { %v877_v59 = vmul.f32 %v876_v56, %v876_v56 }
 0x412   : > { %v918_v60 = vpack.c.bf16 %v877_v59, %v877_v59 }
 0x414   : > { %1324 = vmatmul.mubr.msk.bf16.vlgmr.msra.gmra.mxu1 %vm781_vm3, %v918_v60 }
 0x4d4   : > { %v960_v7 = vpop.f32.mrf.mxu1 }
 0x4d5   : > { %v966_v9 = vmul.f32 %v960_v7, %v914_v43 }
 0x4d6   : > { %v1325_v10 = vpop.f32.mrf.mxu1 }
 0x4d7   : > { %v967_v11 = vmul.f32 %v966_v9, %v697_v8 }
 0x4d8   : > { %v963_v12 = vpop.f32.mrf.mxu1 }
 0x4d9   : > { %v968_v13 = vpack.c.bf16 %v967_v11, %v967_v11 }
 0x4da   : > { %v1326_v15 = vpop.f32.mrf.mxu1 }
 0x4db   : > { %1336 = vmatmul.mubr.msk.bf16.vlgmr.msra.gmra.mxu0 %vm1005_vm5, %v968_v13 }
 0x59b   : > { %v1043_v17 = vpop.f32.mrf.mxu0 }
 0x59c   : > { %v1044_v18 = vadd.f32 %v1043_v17, %v980_v16 }
 0x59d   : > { %v1337_v20 = vpop.f32.mrf.mxu0 }
 0x59e   : > { %v1049_v22 = vadd.f32 %v1044_v18, %v1711_v1 }
 0x59f   : > { %v1046_v19 = vpop.f32.mrf.mxu0 }
 0x5a0   : > { %1050 = vst.msk [vmem:[%s1706_s9] sm:$0xff] %vm482_vm1, %v1049_v22 }
 0x5a1   : > { %v1338_v21 = vpop.f32.mrf.mxu0 }
 0x5a2   : > { %1453 = shalt.err (!%p1450_p8)
}
 0x5a3   : > { %s1454_s9 = scalar_lea.hbm %s1822_s20, 128  ;;  %s1458_s14 = scalar_lea.hbm %s1919_s19, 256 }
 0x5a4   : > { %p1455_p10 = scmp.ne.s32.totalorder %s1822_s20, %s1454_s9  ;;  %p1459_p13 = scmp.lt.s32.totalorder %s1822_s20, %s1919_s19 }
 0x5a5   : > { %p1460_p0 = scmp.lt.s32.totalorder %s1458_s14, %s1454_s9 }
 0x5a6   : > { %p1456_p11 = pnand %p1455_p10, %p1639_p3 }
 0x5a7   : > { %p1461_p1 = por %p1460_p0, %p1459_p13 }
 0x5a8   : > { %p1457_p12 = pneg %p1456_p11 }
 0x5aa   : > { %p1462_p2 = pnand %p1461_p1, %p1457_p12 }
 0x5ac   : > { %1465 = shalt.err (!%p1462_p2)
}
 0x5ad   : > { %1339 = dma.vmem_to_hbm [thread:$0]  (%p1639_p3), %s1824_s24, 128, %s1822_s20, %s1052_s17  }
 0x5ae PF: > { %s1921_s16 = sld [smem:[#allocation9_spill]] }
 0x5af   : > { %s1922_s26 = sld [smem:[#allocation5_spill]] }
 0x5b4   : > { %p1345_p4 = scmp.ge.s32.totalorder %s1921_s16, 2 }
 0x5b5   : > { %s1077_s29 = sand.u32 1, %s1922_s26  }
 0x5b6   : > { %p1342_p5 = pnand %p1345_p4, %p1649_p9  ;;  %s1078_s28 = scalar_lea.sflag [#allocation3], %s1077_s29 }
 0x5b8   : > { %p1343_p6 = pneg %p1342_p5 }
 0x5ba   : > { %1499 = dma.done.wait (%p1343_p6), %s1078_s28, 128  }
 0x5bb   : > { %1501 = vsyncadd (%p1343_p6), %s1078_s28, 4294967168  ;;  %s22_s16 = sadd.s32 1, %s1921_s16   ;;  %s1924_s3 = sld [smem:[#allocation6_spill]] }
 0x5bc   : > { %p19_p7 = scmp.ge.s32.totalorder %s22_s16, 6   ;;  %s1925_s11 = sld [smem:[#allocation14_spill]] }
 0x5bd   : > { %s1926_s12 = sld [smem:[#allocation7_spill]]  ;;  %s1930_s30 = smov %s1508_s10 }
 0x5be   : > { %s1927_s13 = sld [smem:[#allocation8_spill]]  ;;  %21 = sbr.rel (!%p19_p7) target bundleno = 9 (0x9), region = 117 }
 0x5bf   : > { %s1928_s14 = sld [smem:[#allocation10_spill]] }
 0x5c0   : > { %s1929_s15 = sld [smem:[#allocation12_spill]] }
 0x5c1   : > { %s1931_s10 = smov %s1924_s3 }
 0x5c3   :  { %1083 = vsyncpa [#allocation3], 1 }
 0x5c4   :  { %1085 = vsyncpa [#allocation3 + $0x1], 1 }

</bundles_post_ra>
